<compile_context>
chip_gen: v7x
topology: tpu7x:2x2x1
jax: 0.10.0
libtpu: 0.0.40
codegen_flags: <defaults>
</compile_context>

<pallas_src>
import functools

import jax
import jax.numpy as jnp
from jax.experimental import pallas as pl
from jax.experimental.pallas import tpu as pltpu

_LN_EPS = 1e-5


def _vmem_budgets():
    """Gen-gated (tile_budget_bytes, vmem_limit_bytes, min_grid_steps)."""
    try:
        cap = int(getattr(pltpu.get_tpu_info(), "vmem_capacity_bytes", 0) or 0)
    except Exception:
        cap = 0
    if cap >= 100 * 1024 * 1024:
        # v5e / v6e: 128 MiB physical VMEM, single TensorCore. Big tiles; only
        # need enough grid steps for double-buffering.
        return 64 << 20, 96 << 20, 2
    # v7x (64 MiB per TC, 2 TCs) or unknown: conservative budget; keep >= 8
    # grid steps so megacore sharding gives both TensorCores work.
    return 24 << 20, 48 << 20, 8


def _choose_tm(n_rows, emb, n_streams, itemsize, tile_budget, min_steps):
    """Row-tile size from the VMEM budget; returns (tm, sublane_multiple)."""
    sub = max(8, 32 // itemsize)                       # 8 f32, 16 bf16, 32 int8/fp8
    # Each streamed (tm, E) array is double-buffered; add f32 temporaries.
    per_row = n_streams * 2 * emb * itemsize + 4 * emb * 4
    tm = tile_budget // max(per_row, 1)
    tm = min(tm, 1024)                                 # diminishing returns past ~1-4 MiB blocks
    tm = min(tm, max(sub, pl.cdiv(n_rows, min_steps))) # keep >= min_steps grid steps
    tm = max(sub, (tm // sub) * sub)
    return tm, sub


def _ln_affine_store(y, gamma_ref, beta_ref, o_ref, inv_e):
    """One-pass LayerNorm (biased variance, eps=1e-5) + affine, f32 accumulation."""
    s1 = jnp.sum(y, axis=-1, keepdims=True)
    s2 = jnp.sum(y * y, axis=-1, keepdims=True)
    mean = s1 * inv_e
    var = jnp.maximum(s2 * inv_e - mean * mean, 0.0)   # clamp: cancellation guard
    inv_std = jax.lax.rsqrt(var + _LN_EPS)             # EUP slot — effectively free
    gamma = gamma_ref[...].astype(jnp.float32)         # already f32; no-op cast
    beta = beta_ref[...].astype(jnp.float32)
    o_ref[...] = ((y - mean) * inv_std * gamma + beta).astype(o_ref.dtype)


def _fused_kernel(x_ref, gamma_ref, beta_ref, o_ref, *, inv_e, fn):
    # Single HBM input stream: res = fn(x) computed in-VMEM (fn None => identity).
    x = x_ref[...].astype(jnp.float32)
    res = x if fn is None else fn(x)
    _ln_affine_store(res + x, gamma_ref, beta_ref, o_ref, inv_e)


def _two_stream_kernel(res_ref, x_ref, gamma_ref, beta_ref, o_ref, *, inv_e):
    # General path: res = fn(x) precomputed in glue (non-tile-local fn).
    y = res_ref[...].astype(jnp.float32) + x_ref[...].astype(jnp.float32)
    _ln_affine_store(y, gamma_ref, beta_ref, o_ref, inv_e)


def residual_add_layernorm(x, gamma, beta, *, res=None, fn=None):
    """out = LayerNorm(Dropout_eval(res) + x), normalized over the last axis.

    Paths:
      res is None, fn is None : identity fn                     -> 1 input stream
      fn  is not None         : res = fn(x) fused in the kernel -> 1 input stream
      res is not None         : res precomputed in HBM          -> 2 input streams
    """
    orig_shape = x.shape
    E = orig_shape[-1]
    x2 = x.reshape(-1, E)
    N = x2.shape[0]
    gamma2 = gamma.reshape(1, E).astype(jnp.float32)
    beta2 = beta.reshape(1, E).astype(jnp.float32)

    itemsize = jnp.dtype(x.dtype).itemsize
    tile_budget, vmem_limit, min_steps = _vmem_budgets()
    n_in_streams = 2 if res is not None else 1
    tm, sub = _choose_tm(N, E, n_in_streams + 1, itemsize, tile_budget, min_steps)

    # No full-array padding: ragged last block is handled by Pallas' masked
    # out-of-bounds write-back (rows are independent for LayerNorm). Only the
    # tiny N < sublane-group edge case gets padded (< `sub` extra rows).
    n_pad = (-N) % sub if N < sub else 0
    n_rows = N + n_pad

    def pad_rows(a):
        return jnp.pad(a, ((0, n_pad), (0, 0))) if n_pad else a

    inv_e = 1.0 / float(E)
    grid = (pl.cdiv(n_rows, tm),)
    row_spec = pl.BlockSpec((tm, E), lambda i: (i, 0))
    vec_spec = pl.BlockSpec((1, E), lambda i: (0, 0))   # constant index_map: DMA'd once
    # TODO(synk): sweep pipeline_mode=pl.Buffered(3) on row_spec for v7x if xprof
    #             shows exposed DMA at block boundaries.

    cost = pl.CostEstimate(
        flops=8 * N * E,
        transcendentals=N,
        bytes_accessed=(n_in_streams + 1) * N * E * itemsize,
    )
    compiler_params = pltpu.CompilerParams(
        dimension_semantics=("parallel",),
        vmem_limit_bytes=vmem_limit,
    )

    if res is None:
        kernel = functools.partial(_fused_kernel, inv_e=inv_e, fn=fn)
        in_specs = [row_spec, vec_spec, vec_spec]
        args = (pad_rows(x2), gamma2, beta2)
    else:
        # TODO(synk): consider CompilerParams(allow_input_fusion=...) so XLA can fuse an
        #             elementwise producer of `res` into this input instead of HBM.
        kernel = functools.partial(_two_stream_kernel, inv_e=inv_e)
        in_specs = [row_spec, row_spec, vec_spec, vec_spec]
        args = (pad_rows(res.reshape(-1, E)), pad_rows(x2), gamma2, beta2)

    out2 = pl.pallas_call(
        kernel,
        out_shape=jax.ShapeDtypeStruct((n_rows, E), x.dtype),
        grid_spec=pltpu.PrefetchScalarGridSpec(
            num_scalar_prefetch=0,
            grid=grid,
            in_specs=in_specs,
            out_specs=row_spec,
        ),
        compiler_params=compiler_params,
        cost_estimate=cost,
    )(*args)

    if n_pad:
        out2 = out2[:N]
    return out2.reshape(orig_shape)


def residual_add_forward(x, gamma, beta, fn=None, *, fuse_fn=True):
    """ResidualAdd.forward (eval-mode dropout == identity).

    `fn` is the module's self.fn as a JAX callable. If it is elementwise /
    tile-local (the common case), it is traced straight into the kernel so
    `res` never touches HBM. Pass fuse_fn=False for non-tile-local fns
    (e.g. attention); `res` is then computed in glue and streamed separately.
    """
    # TODO(synk): training-mode dropout (Bernoulli mask via pltpu.prng_*) not implemented.
    if fn is None:
        return residual_add_layernorm(x, gamma, beta)
    if fuse_fn:
        return residual_add_layernorm(x, gamma, beta, fn=fn)
    return residual_add_layernorm(x, gamma, beta, res=fn(x))


def _reference(x, res, gamma, beta):
    y = res + x
    mean = jnp.mean(y, axis=-1, keepdims=True)
    var = jnp.mean((y - mean) ** 2, axis=-1, keepdims=True)
    return (y - mean) / jnp.sqrt(var + _LN_EPS) * gamma + beta


if __name__ == "__main__":
    key = jax.random.PRNGKey(0)
    kx, kg, kb, kr = jax.random.split(key, 4)

    # Small but lane-dense shapes: emb is a multiple of 128 (the fast path).
    B, S, E = 2, 8, 128  # batch, seq, emb_size
    x = jax.random.normal(kx, (B, S, E), dtype=jnp.float32)
    # nn.LayerNorm default init is weight=1, bias=0; perturb deterministically
    # so the affine part is actually exercised.
    gamma = 1.0 + 0.1 * jax.random.normal(kg, (E,), dtype=jnp.float32)
    beta = 0.1 * jax.random.normal(kb, (E,), dtype=jnp.float32)

    # Path 1: fn = identity (single-stream path).
    out_id = jax.block_until_ready(residual_add_forward(x, gamma, beta))
    ref_id = _reference(x, x, gamma, beta)
    assert out_id.shape == x.shape
    err = float(jnp.max(jnp.abs(out_id - ref_id)))
    assert jnp.allclose(out_id, ref_id, atol=1e-4, rtol=1e-4), err

    # Path 2: elementwise fn fused in-kernel (res never hits HBM).
    fn = lambda t: 0.5 * t + 1.0
    out_fn = jax.block_until_ready(residual_add_forward(x, gamma, beta, fn=fn))
    ref_fn = _reference(x, fn(x), gamma, beta)
    err = float(jnp.max(jnp.abs(out_fn - ref_fn)))
    assert jnp.allclose(out_fn, ref_fn, atol=1e-4, rtol=1e-4), err

    # Path 3: non-fusible fn -> res precomputed, two-stream kernel.
    out_2s = jax.block_until_ready(
        residual_add_forward(x, gamma, beta, fn=fn, fuse_fn=False))
    err = float(jnp.max(jnp.abs(out_2s - ref_fn)))
    assert jnp.allclose(out_2s, ref_fn, atol=1e-4, rtol=1e-4), err

    # Path 4: ragged row count (N % tm != 0) -> partial last block, no jnp.pad.
    Br, Sr = 2, 9  # N = 18 rows
    xr = jax.random.normal(kr, (Br, Sr, E), dtype=jnp.float32)
    out_rg = jax.block_until_ready(residual_add_forward(xr, gamma, beta, fn=fn))
    ref_rg = _reference(xr, fn(xr), gamma, beta)
    err = float(jnp.max(jnp.abs(out_rg - ref_rg)))
    assert out_rg.shape == xr.shape
    assert jnp.allclose(out_rg, ref_rg, atol=1e-4, rtol=1e-4), err

    print("KERNEL_OK")
</pallas_src>

<mosaic_0001>
module attributes {stable_mosaic.version = 11 : i64} {
  func.func @_fused_kernel(%arg0: i32, %arg1: memref<8x128xf32, #tpu.memory_space<vmem>>, %arg2: memref<1x128xf32, #tpu.memory_space<vmem>>, %arg3: memref<1x128xf32, #tpu.memory_space<vmem>>, %arg4: memref<8x128xf32, #tpu.memory_space<vmem>>) attributes {dimension_semantics = [#tpu.dimension_semantics<parallel>], iteration_bounds = array<i64: 2>, scalar_prefetch = 0 : i64, scratch_operands = 0 : i64, tpu.core_type = #tpu.core_type<tc>, window_params = [{transform_indices = @transform_0, window_bounds = array<i64: 8, 128>}, {pipeline_mode = #tpu.pipeline_mode<synchronous>, transform_indices = @transform_1, window_bounds = array<i64: 1, 128>}, {pipeline_mode = #tpu.pipeline_mode<synchronous>, transform_indices = @transform_2, window_bounds = array<i64: 1, 128>}, {transform_indices = @transform_3, window_bounds = array<i64: 8, 128>}]} {
    %c0 = arith.constant 0 : index
    %c0_0 = arith.constant 0 : index
    %0 = vector.load %arg1[%c0, %c0_0] : memref<8x128xf32, #tpu.memory_space<vmem>>, vector<8x128xf32>
    %1 = arith.addf %0, %0 : vector<8x128xf32>
    %cst = arith.constant dense<0.000000e+00> : vector<8xf32>
    %2 = vector.multi_reduction <add>, %1, %cst [1] : vector<8x128xf32> to vector<8xf32>
    %3 = vector.shape_cast %2 : vector<8xf32> to vector<8x1xf32>
    %4 = arith.mulf %1, %1 : vector<8x128xf32>
    %cst_1 = arith.constant dense<0.000000e+00> : vector<8xf32>
    %5 = vector.multi_reduction <add>, %4, %cst_1 [1] : vector<8x128xf32> to vector<8xf32>
    %6 = vector.shape_cast %5 : vector<8xf32> to vector<8x1xf32>
    %cst_2 = arith.constant 7.812500e-03 : f32
    %7 = vector.broadcast %cst_2 : f32 to vector<8x1xf32>
    %8 = arith.mulf %3, %7 : vector<8x1xf32>
    %cst_3 = arith.constant 7.812500e-03 : f32
    %9 = vector.broadcast %cst_3 : f32 to vector<8x1xf32>
    %10 = arith.mulf %6, %9 : vector<8x1xf32>
    %11 = arith.mulf %8, %8 : vector<8x1xf32>
    %12 = arith.subf %10, %11 : vector<8x1xf32>
    %cst_4 = arith.constant 0.000000e+00 : f32
    %13 = vector.broadcast %cst_4 : f32 to vector<8x1xf32>
    %14 = arith.maximumf %12, %13 : vector<8x1xf32>
    %cst_5 = arith.constant 9.99999974E-6 : f32
    %15 = vector.broadcast %cst_5 : f32 to vector<8x1xf32>
    %16 = arith.addf %14, %15 : vector<8x1xf32>
    %17 = math.rsqrt %16 : vector<8x1xf32>
    %c0_6 = arith.constant 0 : index
    %c0_7 = arith.constant 0 : index
    %18 = vector.load %arg2[%c0_6, %c0_7] : memref<1x128xf32, #tpu.memory_space<vmem>>, vector<1x128xf32>
    %c0_8 = arith.constant 0 : index
    %c0_9 = arith.constant 0 : index
    %19 = vector.load %arg3[%c0_8, %c0_9] : memref<1x128xf32, #tpu.memory_space<vmem>>, vector<1x128xf32>
    %20 = vector.broadcast %8 : vector<8x1xf32> to vector<8x128xf32>
    %21 = arith.subf %1, %20 : vector<8x128xf32>
    %22 = vector.broadcast %17 : vector<8x1xf32> to vector<8x128xf32>
    %23 = arith.mulf %21, %22 : vector<8x128xf32>
    %24 = vector.broadcast %18 : vector<1x128xf32> to vector<8x128xf32>
    %25 = arith.mulf %23, %24 : vector<8x128xf32>
    %26 = vector.broadcast %19 : vector<1x128xf32> to vector<8x128xf32>
    %27 = arith.addf %25, %26 : vector<8x128xf32>
    %c0_10 = arith.constant 0 : index
    %c0_11 = arith.constant 0 : index
    %28 = vector.load %arg4[%c0_10, %c0_11] : memref<8x128xf32, #tpu.memory_space<vmem>>, vector<8x128xf32>
    tpu.vector_store %arg4[%c0_10, %c0_11], %27 {strides = array<i32>} : memref<8x128xf32, #tpu.memory_space<vmem>>, vector<8x128xf32>,
    return
  }
  func.func @transform_0(%arg0: i32) -> (i32, i32) {
    %c0_i32 = arith.constant 0 : i32
    %c0_i32_0 = arith.constant 0 : i32
    return %arg0, %c0_i32 : i32, i32
  }
  func.func @transform_1(%arg0: i32) -> (i32, i32) {
    %c0_i32 = arith.constant 0 : i32
    %c0_i32_0 = arith.constant 0 : i32
    %c0_i32_1 = arith.constant 0 : i32
    return %c0_i32, %c0_i32_0 : i32, i32
  }
  func.func @transform_2(%arg0: i32) -> (i32, i32) {
    %c0_i32 = arith.constant 0 : i32
    %c0_i32_0 = arith.constant 0 : i32
    %c0_i32_1 = arith.constant 0 : i32
    return %c0_i32, %c0_i32_0 : i32, i32
  }
  func.func @transform_3(%arg0: i32) -> (i32, i32) {
    %c0_i32 = arith.constant 0 : i32
    %c0_i32_0 = arith.constant 0 : i32
    return %arg0, %c0_i32 : i32, i32
  }
}

</mosaic_0001>

<bundles_post_ra>
// kernel: tpu_custom_call.1
= control target key start
LH: loop header
LB: loop body
LE: loop exit
PB: predicated region body
PF: predicated region fallthrough
CT: control target
= control target key end

     0   :  { %8 = vsyncpa [#allocation3], 0  ;;  %s652_s0 = inlined_call_operand.hbm [shape: f32[16,128], index: 0, kind: input, shape index: {}]   ;;  %s653_s1 = inlined_call_operand.vmem [shape: f32[1,128], index: 1, kind: input, shape index: {}]   ;;  %s654_s2 = inlined_call_operand.vmem [shape: f32[1,128], index: 2, kind: input, shape index: {}]   ;;  %s655_s3 = inlined_call_operand.hbm [shape: f32[16,128], index: 3, kind: output, shape index: {}]  }
   0x1   :  { %10 = vsyncpa [#allocation3 + $0x1], 0 }
   0x2   :  { %11 = vsyncpa [#allocation4], 0 }
   0x3   :  { %13 = vsyncpa [#allocation4 + $0x1], 0  ;;  %s485_s12 = smov 0   ;;  %s487_s13 = smov 0  }
   0x4   :  { %s489_s14 = smov 0   ;;  %s491_s15 = smov 0  }
   0x5 LB: > { %s506_s16 = sadd.s32 4294967295, %s461_s15   ;;  %s303_s17 = sadd.s32 4294967294, %s461_s15   ;;  %s461_s15 = sphi %s491_s15, %s670_s15   ;;  %s457_s14 = sphi %s489_s14, %s669_s14   ;;  %s453_s13 = sphi %s487_s13, %s668_s13   ;;  %s449_s12 = sphi %s485_s12, %s667_s12  }
   0x6   : > { %s510_s18 = sadd.s32 1, %s461_s15   ;;  %s26_s19 = sadd.s32 1, %s457_s14 }
   0x7   : > { %s23_s20 = ssub.s32 %s461_s15, %s510_s18  ;;  %p33_p0 = scmp.ne.s32.totalorder %s457_s14, %s453_s13 }
   0x8   : > { %p24_p1 = scmp.eq.s32.totalorder %s23_s20, 0  ;;  %p34_p2 = scmp.eq.s32.totalorder %s461_s15, 0 }
   0x9   : > { %p39_p3 = scmp.ne.s32.totalorder %s453_s13, %s449_s12  ;;  %p40_p4 = scmp.eq.s32.totalorder %s506_s16, 0 }
   0xa   : > { %s522_s21 = scalar_select %p24_p1, %s457_s14, %s26_s19  }
   0xb   : > { %p524_p5 = por %p34_p2, %p33_p0  ;;  %p528_p6 = por %p40_p4, %p39_p3 }
   0xc   : > { %p105_p7 = scmp.eq.s32.totalorder %s506_s16, 1  ;;  %p111_p8 = scmp.eq.s32.totalorder %s303_s17, 1 }
   0xd   : > { %p329_p10 = scmp.lt.s32.totalorder %s461_s15, 2  ;;  %s137_s26 = sand.u32 1, %s457_s14  }
   0xe   : > { %p535_p11 = por %p105_p7, %p33_p0  ;;  %p539_p12 = por %p111_p8, %p39_p3 }
   0xf   : > { %s307_s27 = sshll.u32 %s461_s15, 7  ;;  %s306_s28 = sshll.u32 %s137_s26, 3 }
  0x10   : > { %s659_s24 = scalar_select %p535_p11, 1, 0 }
  0x11   : > { %s660_s25 = scalar_select %p539_p12, 1, 0 }
  0x12   : > { %s548_s4 = scalar_lea.hbm %s652_s0, %s307_s27  ;;  %s141_s5 = scalar_lea.vmem [#allocation2], %s306_s28 }
  0x13   : > { %s148_s6 = sshll.u32 %s141_s5, 4  ;;  %p552_p13 = pnand %p329_p10, %p524_p5  ;;  %s556_s6 = int_to_ptr.vmem [resolvable:$true] %s148_s6 }
  0x14   : > { %s138_s8 = scalar_lea.sflag [#allocation3], %s137_s26  ;;  %s365_s9 = scalar_lea.hbm %s548_s4, 128 }
  0x15   : > { %p366_p2 = scmp.ne.s32.totalorder %s548_s4, %s365_s9  ;;  %p367_p3 = pneg %p552_p13 }
  0x16   : > { %s370_s17 = scalar_lea.hbm %s652_s0, 256  ;;  %p371_p5 = scmp.lt.u32.totalorder %s548_s4, %s652_s0 }
  0x17   : > { %p368_p4 = pnand %p367_p3, %p366_p2  ;;  %p372_p8 = scmp.lt.u32.totalorder %s370_s17, %s365_s9 }
  0x18   : > { %p374_p9 = scmp.lt.u32.totalorder %s365_s9, %s548_s4 }
  0x19   : > { %p369_p7 = pneg %p368_p4  ;;  %p373_p10 = por %p372_p8, %p371_p5 }
  0x1b   : > { %p375_p0 = por %p374_p9, %p373_p10 }
  0x1d   : > { %p376_p1 = pnand %p375_p0, %p369_p7 }
  0x1f   : > { %379 = shalt.err (!%p376_p1)
}
  0x20   : > { %s380_s22 = scalar_lea.vmem %s556_s6, 128  ;;  %s463_s26 = smov [#allocation2]  }
  0x21   : > { %p381_p2 = scmp.ne.s32.totalorder %s556_s6, %s380_s22  ;;  %s385_s27 = sshll.u32 %s463_s26, 4  ;;  %s386_s27 = int_to_ptr.vmem [resolvable:$false] %s385_s27 }
  0x22   : > { %s387_s28 = scalar_lea.vmem %s386_s27, 256  ;;  %p388_p11 = scmp.lt.s32.totalorder %s556_s6, %s386_s27 }
  0x23   : > { %p383_p4 = pnand %p381_p2, %p367_p3  ;;  %p389_p5 = scmp.lt.s32.totalorder %s387_s28, %s380_s22 }
  0x25   : > { %p384_p12 = pneg %p383_p4  ;;  %p390_p8 = por %p389_p5, %p388_p11 }
  0x27   : > { %p391_p9 = pnand %p390_p8, %p384_p12 }
  0x29   : > { %394 = shalt.err (!%p391_p9)
}
  0x2a   : > { %324 = dma.hbm_to_vmem [thread:$0]  (!%p552_p13), %s548_s4, 128, %s556_s6, %s138_s8  }
  0x2b   : > { %p662_p0 = scmp.lt.s32.totalorder %s461_s15, 3  ;;  %p663_p1 = scmp.ge.s32.totalorder %s461_s15, 1 }
  0x2d   : > { %p154_p3 = pnand %p663_p1, %p662_p0 }
  0x2e   : > { %s590_s29 = sand.u32 (!%p154_p3), 1, %s453_s13  }
  0x2f   : > { %157 = sbr.rel (%p154_p3) target bundleno = 243 (0xf3), region = 32  ;;  %s309_s30 = sshll.u32 (!%p154_p3), %s590_s29, 3 }
  0x30   : > { %s160_s5 = scalar_lea.sflag (!%p154_p3), [#allocation3], %s590_s29  ;;  %s163_s9 = scalar_lea.vmem (!%p154_p3), [#allocation2], %s309_s30 }
  0x36   : > { %440 = dma.done.wait (%p528_p6), %s160_s5, 128  }
  0x37   : > { %442 = vsyncadd (%p528_p6), %s160_s5, 4294967168  ;;  %v186_v0 = vld [vmem:[%s163_s9] sm:$0xff]  ;;  %s314_s8 = sshll.u32 %s506_s16, 7  ;;  %s185_s10 = scalar_lea.vmem [#allocation5], %s309_s30 }
  0x38   : > { %v187_v1 = vadd.f32 %v186_v0, %v186_v0  ;;  %v311_v13 = vld [vmem:[%s653_s1] ss:$0 sm:$0xff]  ;;  %s233_s11 = sshll.u32 %s185_s10, 4  ;;  %s608_s20 = scalar_lea.hbm %s655_s3, %s314_s8  ;;  %s610_s11 = int_to_ptr.vmem [resolvable:$true] %s233_s11 }
  0x39   : > { %v312_v15 = vld [vmem:[%s654_s2] ss:$0 sm:$0xff]  ;;  %s220_s22 = scalar_lea.sflag [#allocation4], %s590_s29  ;;  %s395_s26 = scalar_lea.vmem %s610_s11, 128 }
  0x3a   : > { %188 = vadd.xlane.f32.xlu0 %v187_v1  ;;  %v190_v2 = vmul.f32 %v187_v1, %v187_v1  ;;  %p396_p6 = scmp.ne.s32.totalorder %s610_s11, %s395_s26  ;;  %p664_p11 = scmp.ne.s32.totalorder %s659_s24, 0 }
  0x3b   : > { %s464_s16 = smov [#allocation5]  }
  0x3c   : > { %p397_p12 = pnand %p396_p6, %p664_p11  ;;  %s399_s27 = sshll.u32 %s464_s16, 4  ;;  %s400_s27 = int_to_ptr.vmem [resolvable:$false] %s399_s27 }
  0x3d   : > { %s401_s28 = scalar_lea.vmem %s400_s27, 256  ;;  %p402_p7 = scmp.lt.s32.totalorder %s610_s11, %s400_s27 }
  0x3e   : > { %191 = vadd.xlane.f32.xlu0 %v190_v2  ;;  %p398_p13 = pneg %p397_p12  ;;  %p403_p10 = scmp.lt.s32.totalorder %s401_s28, %s395_s26 }
  0x40   : > { %p404_p2 = por %p403_p10, %p402_p7 }
  0x42   : > { %p405_p4 = pnand %p404_p2, %p398_p13 }
  0xc7   : > { %v189_v3 = vpop.xlane.xlu0 %188 }
  0xc8   : > { %v193_v4 = vmul.f32 0.0078125, %v189_v3 }
  0xca   : > { %v195_v6 = vmul.f32 %v193_v4, %v193_v4  ;;  %v202_v11 = vsub.f32 %v187_v1, %v193_v4 }
  0xcb   : > { %v192_v5 = vpop.xlane.xlu0 %191 }
  0xcc   : > { %v194_v7 = vmul.f32 0.0078125, %v192_v5 }
  0xce   : > { %v196_v8 = vsub.f32 %v194_v7, %v195_v6 }
  0xd0   : > { %v197_v9 = vmax.f32 %v196_v8, 0.0 }
  0xd2   : > { %v198_v10 = vadd.f32 1e-05, %v197_v9 }
  0xd4   : > { %363 = vrsqrt.f32 %v198_v10 }
  0xde   : > { %v364_v12 = vpop.eup %363 }
  0xdf   : > { %v203_v14 = vmul.f32 %v364_v12, %v202_v11 }
  0xe1   : > { %v210_v16 = vmul.f32 %v311_v13, %v203_v14 }
  0xe3   : > { %v217_v17 = vadd.f32 %v312_v15, %v210_v16 }
  0xe5   : > { %218 = vst [vmem:[%s185_s10] sm:$0xff] %v217_v17 }
  0xe6   : > { %408 = shalt.err (!%p405_p4)
}
  0xe7   : > { %s409_s29 = scalar_lea.hbm %s608_s20, 128  ;;  %s413_s9 = scalar_lea.hbm %s655_s3, 256 }
  0xe8   : > { %p410_p5 = scmp.ne.s32.totalorder %s608_s20, %s409_s29  ;;  %p414_p0 = scmp.lt.u32.totalorder %s608_s20, %s655_s3 }
  0xe9   : > { %p415_p1 = scmp.lt.u32.totalorder %s413_s9, %s409_s29  ;;  %p417_p6 = scmp.lt.u32.totalorder %s409_s29, %s608_s20 }
  0xea   : > { %p411_p8 = pnand %p410_p5, %p664_p11 }
  0xeb   : > { %p416_p3 = por %p415_p1, %p414_p0 }
  0xec   : > { %p412_p9 = pneg %p411_p8 }
  0xed   : > { %p418_p12 = por %p417_p6, %p416_p3 }
  0xef   : > { %p419_p13 = pnand %p418_p12, %p412_p9 }
  0xf1   : > { %422 = shalt.err (!%p419_p13)
}
  0xf2   : > { %319 = dma.vmem_to_hbm [thread:$0]  (%p664_p11), %s610_s11, 128, %s608_s20, %s220_s22  }
  0xf3 PF: > { %s245_s6 = sand.u32 1, %s449_s12   ;;  %p665_p7 = scmp.ne.s32.totalorder %s660_s25, 0 }
  0xf4   : > { %p666_p10 = scmp.ge.s32.totalorder %s461_s15, 2  ;;  %s246_s7 = scalar_lea.sflag [#allocation4], %s245_s6 }
  0xf6   : > { %p326_p2 = pnand %p666_p10, %p665_p7 }
  0xf8   : > { %444 = dma.done.wait (!%p326_p2), %s246_s7, 128  }
  0xf9   : > { %446 = vsyncadd (!%p326_p2), %s246_s7, 4294967168  ;;  %p16_p4 = scmp.ge.s32.totalorder %s510_s18, 4   ;;  %s667_s12 = smov %s453_s13 }
  0xfa   : > { %s668_s13 = smov %s457_s14  ;;  %s669_s14 = smov %s522_s21 }
  0xfb   : > { %s670_s15 = smov %s510_s18  ;;  %18 = sbr.rel (!%p16_p4) target bundleno = 5 (0x5), region = 77 }
 0x102   :  { %251 = vsyncpa [#allocation3], 1 }
 0x103   :  { %253 = vsyncpa [#allocation3 + $0x1], 1 }
 0x104   :  { %254 = vsyncpa [#allocation4], 1 }
 0x105   :  { %256 = vsyncpa [#allocation4 + $0x1], 1 }

</bundles_post_ra>
